<compile_context>
chip_gen: v7x
topology: tpu7x:2x2x1
jax: 0.10.0
libtpu: 0.0.40
codegen_flags: <defaults>
</compile_context>

<pallas_src>
import functools

import jax
import jax.numpy as jnp
from jax.experimental import pallas as pl
from jax.experimental.pallas import tpu as pltpu


def _round_up(x, m):
    return ((x + m - 1) // m) * m


def groknet_kernel(a_ref, b_ref, ea_ref, eb_ref, w_ref, bias_ref, wo_ref,
                   bo_ref, out_ref, *, num_layers):
    """GrokNet forward on one (TB, ·) batch tile.

    a_ref  : (TB, 1)           int32    token index a
    b_ref  : (TB, 1)           int32    token index b
    ea_ref : (P_pad, H_pad)    bfloat16 embedding A, values in left half
    eb_ref : (P_pad, H_pad)    bfloat16 embedding B, values in right half
    w_ref  : (L, H_pad, H_pad) bfloat16 MLP weights, stored (in, out)
    bias_ref:(L, 1, H_pad)     float32  MLP biases
    wo_ref : (H_pad, P_pad)    bfloat16 output weight, stored (in, out)
    bo_ref : (1, P_pad)        float32  output bias
    out_ref: (TB, P_pad)       float32  logits (padded)
    """
    TB = out_ref.shape[0]
    P_pad = ea_ref.shape[0]

    a_idx = a_ref[...]                                   # (TB, 1) int32
    b_idx = b_ref[...]                                   # (TB, 1) int32

    # Exact one-hot selection (VPU compare), fed straight to the MXU in bf16.
    iota = jax.lax.broadcasted_iota(jnp.int32, (TB, P_pad), 1)
    onehot_a = (iota == a_idx).astype(jnp.bfloat16)      # (TB, P_pad)
    onehot_b = (iota == b_idx).astype(jnp.bfloat16)      # (TB, P_pad)

    # Fused embedding gather + concat: the two tables occupy disjoint column
    # halves, so summing the two MXU passes gives the concatenated hidden
    # state (TB, H_pad) with no cross-lane shuffle.
    h = (jnp.dot(onehot_a, ea_ref[...], preferred_element_type=jnp.float32)
         + jnp.dot(onehot_b, eb_ref[...], preferred_element_type=jnp.float32))

    # MLP: num_layers x (Linear + ReLU).  bf16 operands, f32 accumulation.
    # Static unroll is fine for small L.
    # TODO(synk): switch to lax.fori_loop(..., unroll=True) if num_layers grows.
    for i in range(num_layers):
        h = (jnp.dot(h.astype(jnp.bfloat16), w_ref[i],
                     preferred_element_type=jnp.float32) + bias_ref[i])
        h = jnp.maximum(h, 0.0)

    # Output projection (lane-dense padded logits).
    out_ref[...] = (jnp.dot(h.astype(jnp.bfloat16), wo_ref[...],
                            preferred_element_type=jnp.float32) + bo_ref[...])


def prepare_padded_params(params):
    """Zero-pad/pack the f32 master params into the kernel's bf16 layout."""
    ea, eb, w, b, wo, bo = params
    P, half = ea.shape
    L, H, _ = w.shape
    H_pad = _round_up(H, 128)
    P_pad = _round_up(P, 128)

    ea_pad = (jnp.zeros((P_pad, H_pad), jnp.bfloat16)
              .at[:P, :half].set(ea.astype(jnp.bfloat16)))
    eb_pad = (jnp.zeros((P_pad, H_pad), jnp.bfloat16)
              .at[:P, half:2 * half].set(eb.astype(jnp.bfloat16)))
    w_pad = (jnp.zeros((L, H_pad, H_pad), jnp.bfloat16)
             .at[:, :H, :H].set(w.astype(jnp.bfloat16)))
    b_pad = jnp.zeros((L, 1, H_pad), jnp.float32).at[:, :, :H].set(b)
    wo_pad = (jnp.zeros((H_pad, P_pad), jnp.bfloat16)
              .at[:H, :P].set(wo.astype(jnp.bfloat16)))
    bo_pad = jnp.zeros((1, P_pad), jnp.float32).at[:, :P].set(bo)
    return ea_pad, eb_pad, w_pad, b_pad, wo_pad, bo_pad


def groknet_forward(x, params):
    ea_p, eb_p, w_p, b_p, wo_p, bo_p = prepare_padded_params(params)
    B = x.shape[0]
    P = params[0].shape[0]          # modulus
    L, H_pad, _ = w_p.shape
    P_pad = ea_p.shape[0]
    P_out_pad = wo_p.shape[1]

    # Batch tiling: sublane-aligned, up to 512 rows per tile, grid over tiles.
    B_pad = _round_up(B, 8)
    TB = min(B_pad, 512)
    B_pad = _round_up(B_pad, TB)

    a_idx = jnp.zeros((B_pad, 1), jnp.int32).at[:B, 0].set(x[:, 0])
    b_idx = jnp.zeros((B_pad, 1), jnp.int32).at[:B, 0].set(x[:, 1])

    kernel = functools.partial(groknet_kernel, num_layers=L)
    out_padded = pl.pallas_call(
        kernel,
        out_shape=jax.ShapeDtypeStruct((B_pad, P_out_pad), jnp.float32),
        grid=(B_pad // TB,),
        in_specs=[
            pl.BlockSpec((TB, 1), lambda i: (i, 0)),                # a_idx
            pl.BlockSpec((TB, 1), lambda i: (i, 0)),                # b_idx
            pl.BlockSpec((P_pad, H_pad), lambda i: (0, 0)),         # ea (resident)
            pl.BlockSpec((P_pad, H_pad), lambda i: (0, 0)),         # eb (resident)
            pl.BlockSpec((L, H_pad, H_pad), lambda i: (0, 0, 0)),   # W  (resident)
            pl.BlockSpec((L, 1, H_pad), lambda i: (0, 0, 0)),       # b  (resident)
            pl.BlockSpec((H_pad, P_out_pad), lambda i: (0, 0)),     # Wo (resident)
            pl.BlockSpec((1, P_out_pad), lambda i: (0, 0)),         # bo (resident)
        ],
        out_specs=pl.BlockSpec((TB, P_out_pad), lambda i: (i, 0)),
        compiler_params=pltpu.CompilerParams(
            dimension_semantics=("parallel",),          # megacore / v7x dual-TC
            vmem_limit_bytes=48 * 1024 * 1024,          # fits v7x's 64 MiB VMEM
        ),
    )(a_idx, b_idx, ea_p, eb_p, w_p, b_p, wo_p, bo_p)

    return out_padded[:B, :P]


def init_groknet_params(key, modulus, hidden_dim, num_layers):
    """Deterministic init mirroring GrokNet._init_weights (f32 masters).

    nn.Linear: xavier_uniform_(gain=0.5), bias=0.  nn.Embedding: normal std=0.02.
    PyTorch Linear weight is (out, in); we store the transpose (in, out).
    """
    keys = jax.random.split(key, num_layers + 3)
    half = hidden_dim // 2

    ea = 0.02 * jax.random.normal(keys[0], (modulus, half), jnp.float32)
    eb = 0.02 * jax.random.normal(keys[1], (modulus, half), jnp.float32)

    def xavier(k, fan_in, fan_out, gain=0.5):
        bound = gain * jnp.sqrt(6.0 / (fan_in + fan_out))
        w_pt = jax.random.uniform(k, (fan_out, fan_in), jnp.float32,
                                  minval=-bound, maxval=bound)
        return w_pt.T

    w = jnp.stack([xavier(keys[2 + i], hidden_dim, hidden_dim)
                   for i in range(num_layers)])                     # (L, H, H)
    b = jnp.zeros((num_layers, 1, hidden_dim), jnp.float32)         # (L, 1, H)
    wo = xavier(keys[2 + num_layers], hidden_dim, modulus)          # (H, P)
    bo = jnp.zeros((1, modulus), jnp.float32)                       # (1, P)
    return ea, eb, w, b, wo, bo


def groknet_reference_f32(x, params):
    """Pure-JAX f32 reference matching the PyTorch module semantics."""
    ea, eb, w, b, wo, bo = params
    h = jnp.concatenate([ea[x[:, 0]], eb[x[:, 1]]], axis=-1)
    for i in range(w.shape[0]):
        h = jnp.maximum(h @ w[i] + b[i], 0.0)
    return h @ wo + bo


def groknet_reference_bf16(x, params):
    """Pure-JAX reference mirroring the kernel's bf16-operand / f32-accum math."""
    ea, eb, w, b, wo, bo = params
    bf = lambda t: t.astype(jnp.bfloat16)
    a_emb = bf(ea)[x[:, 0]].astype(jnp.float32)
    b_emb = bf(eb)[x[:, 1]].astype(jnp.float32)
    h = jnp.concatenate([a_emb, b_emb], axis=-1)
    for i in range(w.shape[0]):
        h = jnp.dot(bf(h), bf(w[i]), preferred_element_type=jnp.float32) + b[i]
        h = jnp.maximum(h, 0.0)
    return jnp.dot(bf(h), bf(wo), preferred_element_type=jnp.float32) + bo


if __name__ == "__main__":
    modulus = 17
    hidden_dim = 32
    num_layers = 2
    batch = 8

    key = jax.random.PRNGKey(0)
    pkey, xkey = jax.random.split(key)
    params = init_groknet_params(pkey, modulus, hidden_dim, num_layers)

    x = jax.random.randint(xkey, (batch, 2), 0, modulus, dtype=jnp.int32)

    out = groknet_forward(x, params)
    out = jax.block_until_ready(out)
    assert out.shape == (batch, modulus)

    # Tight check against a reference that mirrors the kernel's bf16/f32 math.
    ref_bf16 = groknet_reference_bf16(x, params)
    assert jnp.allclose(out, ref_bf16, atol=1e-4, rtol=1e-4), (
        float(jnp.max(jnp.abs(out - ref_bf16))))

    # Loose check against the full-f32 PyTorch-equivalent semantics.
    ref_f32 = groknet_reference_f32(x, params)
    assert jnp.allclose(out, ref_f32, atol=1e-2, rtol=1e-2), (
        float(jnp.max(jnp.abs(out - ref_f32))))

    print("KERNEL_OK")
</pallas_src>

<mosaic_0001>
module attributes {stable_mosaic.version = 11 : i64} {
  func.func @groknet_kernel(%arg0: i32, %arg1: memref<8x1xi32, #tpu.memory_space<vmem>>, %arg2: memref<8x1xi32, #tpu.memory_space<vmem>>, %arg3: memref<128x128xbf16, #tpu.memory_space<vmem>>, %arg4: memref<128x128xbf16, #tpu.memory_space<vmem>>, %arg5: memref<2x128x128xbf16, #tpu.memory_space<vmem>>, %arg6: memref<2x1x128xf32, #tpu.memory_space<vmem>>, %arg7: memref<128x128xbf16, #tpu.memory_space<vmem>>, %arg8: memref<1x128xf32, #tpu.memory_space<vmem>>, %arg9: memref<8x128xf32, #tpu.memory_space<vmem>>) attributes {dimension_semantics = [#tpu.dimension_semantics<parallel>], iteration_bounds = array<i64: 1>, scalar_prefetch = 0 : i64, scratch_operands = 0 : i64, tpu.core_type = #tpu.core_type<tc>, window_params = [{transform_indices = @transform_0, window_bounds = array<i64: 8, 1>}, {transform_indices = @transform_1, window_bounds = array<i64: 8, 1>}, {pipeline_mode = #tpu.pipeline_mode<synchronous>, transform_indices = @transform_2, window_bounds = array<i64: 128, 128>}, {pipeline_mode = #tpu.pipeline_mode<synchronous>, transform_indices = @transform_3, window_bounds = array<i64: 128, 128>}, {pipeline_mode = #tpu.pipeline_mode<synchronous>, transform_indices = @transform_4, window_bounds = array<i64: 2, 128, 128>}, {pipeline_mode = #tpu.pipeline_mode<synchronous>, transform_indices = @transform_5, window_bounds = array<i64: 2, 1, 128>}, {pipeline_mode = #tpu.pipeline_mode<synchronous>, transform_indices = @transform_6, window_bounds = array<i64: 128, 128>}, {pipeline_mode = #tpu.pipeline_mode<synchronous>, transform_indices = @transform_7, window_bounds = array<i64: 1, 128>}, {transform_indices = @transform_8, window_bounds = array<i64: 8, 128>}]} {
    %c0 = arith.constant 0 : index
    %c0_0 = arith.constant 0 : index
    %0 = vector.load %arg1[%c0, %c0_0] : memref<8x1xi32, #tpu.memory_space<vmem>>, vector<8x1xi32>
    %c0_1 = arith.constant 0 : index
    %c0_2 = arith.constant 0 : index
    %1 = vector.load %arg2[%c0_1, %c0_2] : memref<8x1xi32, #tpu.memory_space<vmem>>, vector<8x1xi32>
    %2 = tpu.iota {dimensions = array<i32: 1>} : vector<8x128xi32>
    %3 = vector.broadcast %0 : vector<8x1xi32> to vector<8x128xi32>
    %4 = arith.cmpi eq, %2, %3 : vector<8x128xi32>
    %5 = arith.extui %4 : vector<8x128xi1> to vector<8x128xi32>
    %6 = arith.sitofp %5 : vector<8x128xi32> to vector<8x128xf32>
    %7 = arith.truncf %6 : vector<8x128xf32> to vector<8x128xbf16>
    %8 = vector.broadcast %1 : vector<8x1xi32> to vector<8x128xi32>
    %9 = arith.cmpi eq, %2, %8 : vector<8x128xi32>
    %10 = arith.extui %9 : vector<8x128xi1> to vector<8x128xi32>
    %11 = arith.sitofp %10 : vector<8x128xi32> to vector<8x128xf32>
    %12 = arith.truncf %11 : vector<8x128xf32> to vector<8x128xbf16>
    %c0_3 = arith.constant 0 : index
    %c0_4 = arith.constant 0 : index
    %13 = vector.load %arg3[%c0_3, %c0_4] : memref<128x128xbf16, #tpu.memory_space<vmem>>, vector<128x128xbf16>
    %cst = arith.constant dense<0.000000e+00> : vector<8x128xf32>
    %14 = tpu.matmul %7, %13, %cst {dimension_numbers = #tpu.dot_dimension_numbers<[1], [0], [0], [1], [0, 0, 1, 1], [], []>} : vector<8x128xbf16>, vector<128x128xbf16>, vector<8x128xf32> -> vector<8x128xf32>
    %c0_5 = arith.constant 0 : index
    %c0_6 = arith.constant 0 : index
    %15 = vector.load %arg4[%c0_5, %c0_6] : memref<128x128xbf16, #tpu.memory_space<vmem>>, vector<128x128xbf16>
    %cst_7 = arith.constant dense<0.000000e+00> : vector<8x128xf32>
    %16 = tpu.matmul %12, %15, %cst_7 {dimension_numbers = #tpu.dot_dimension_numbers<[1], [0], [0], [1], [0, 0, 1, 1], [], []>} : vector<8x128xbf16>, vector<128x128xbf16>, vector<8x128xf32> -> vector<8x128xf32>
    %17 = arith.addf %14, %16 : vector<8x128xf32>
    %18 = arith.truncf %17 : vector<8x128xf32> to vector<8x128xbf16>
    %c0_8 = arith.constant 0 : index
    %c0_9 = arith.constant 0 : index
    %c0_10 = arith.constant 0 : index
    %19 = vector.load %arg5[%c0_8, %c0_9, %c0_10] : memref<2x128x128xbf16, #tpu.memory_space<vmem>>, vector<1x128x128xbf16>
    %20 = vector.shape_cast %19 : vector<1x128x128xbf16> to vector<128x128xbf16>
    %cst_11 = arith.constant dense<0.000000e+00> : vector<8x128xf32>
    %21 = tpu.matmul %18, %20, %cst_11 {dimension_numbers = #tpu.dot_dimension_numbers<[1], [0], [0], [1], [0, 0, 1, 1], [], []>} : vector<8x128xbf16>, vector<128x128xbf16>, vector<8x128xf32> -> vector<8x128xf32>
    %c0_12 = arith.constant 0 : index
    %c0_13 = arith.constant 0 : index
    %c0_14 = arith.constant 0 : index
    %22 = vector.load %arg6[%c0_12, %c0_13, %c0_14] : memref<2x1x128xf32, #tpu.memory_space<vmem>>, vector<1x1x128xf32>
    %23 = vector.shape_cast %22 : vector<1x1x128xf32> to vector<1x128xf32>
    %24 = vector.broadcast %23 : vector<1x128xf32> to vector<8x128xf32>
    %25 = arith.addf %21, %24 : vector<8x128xf32>
    %cst_15 = arith.constant 0.000000e+00 : f32
    %26 = vector.broadcast %cst_15 : f32 to vector<8x128xf32>
    %27 = arith.maximumf %25, %26 : vector<8x128xf32>
    %28 = arith.truncf %27 : vector<8x128xf32> to vector<8x128xbf16>
    %c1 = arith.constant 1 : index
    %c0_16 = arith.constant 0 : index
    %c0_17 = arith.constant 0 : index
    %29 = vector.load %arg5[%c1, %c0_16, %c0_17] : memref<2x128x128xbf16, #tpu.memory_space<vmem>>, vector<1x128x128xbf16>
    %30 = vector.shape_cast %29 : vector<1x128x128xbf16> to vector<128x128xbf16>
    %cst_18 = arith.constant dense<0.000000e+00> : vector<8x128xf32>
    %31 = tpu.matmul %28, %30, %cst_18 {dimension_numbers = #tpu.dot_dimension_numbers<[1], [0], [0], [1], [0, 0, 1, 1], [], []>} : vector<8x128xbf16>, vector<128x128xbf16>, vector<8x128xf32> -> vector<8x128xf32>
    %c1_19 = arith.constant 1 : index
    %c0_20 = arith.constant 0 : index
    %c0_21 = arith.constant 0 : index
    %32 = vector.load %arg6[%c1_19, %c0_20, %c0_21] : memref<2x1x128xf32, #tpu.memory_space<vmem>>, vector<1x1x128xf32>
    %33 = vector.shape_cast %32 : vector<1x1x128xf32> to vector<1x128xf32>
    %34 = vector.broadcast %33 : vector<1x128xf32> to vector<8x128xf32>
    %35 = arith.addf %31, %34 : vector<8x128xf32>
    %cst_22 = arith.constant 0.000000e+00 : f32
    %36 = vector.broadcast %cst_22 : f32 to vector<8x128xf32>
    %37 = arith.maximumf %35, %36 : vector<8x128xf32>
    %38 = arith.truncf %37 : vector<8x128xf32> to vector<8x128xbf16>
    %c0_23 = arith.constant 0 : index
    %c0_24 = arith.constant 0 : index
    %39 = vector.load %arg7[%c0_23, %c0_24] : memref<128x128xbf16, #tpu.memory_space<vmem>>, vector<128x128xbf16>
    %cst_25 = arith.constant dense<0.000000e+00> : vector<8x128xf32>
    %40 = tpu.matmul %38, %39, %cst_25 {dimension_numbers = #tpu.dot_dimension_numbers<[1], [0], [0], [1], [0, 0, 1, 1], [], []>} : vector<8x128xbf16>, vector<128x128xbf16>, vector<8x128xf32> -> vector<8x128xf32>
    %c0_26 = arith.constant 0 : index
    %c0_27 = arith.constant 0 : index
    %41 = vector.load %arg8[%c0_26, %c0_27] : memref<1x128xf32, #tpu.memory_space<vmem>>, vector<1x128xf32>
    %42 = vector.broadcast %41 : vector<1x128xf32> to vector<8x128xf32>
    %43 = arith.addf %40, %42 : vector<8x128xf32>
    %c0_28 = arith.constant 0 : index
    %c0_29 = arith.constant 0 : index
    %44 = vector.load %arg9[%c0_28, %c0_29] : memref<8x128xf32, #tpu.memory_space<vmem>>, vector<8x128xf32>
    tpu.vector_store %arg9[%c0_28, %c0_29], %43 {strides = array<i32>} : memref<8x128xf32, #tpu.memory_space<vmem>>, vector<8x128xf32>,
    return
  }
  func.func @transform_0(%arg0: i32) -> (i32, i32) {
    %c0_i32 = arith.constant 0 : i32
    %c0_i32_0 = arith.constant 0 : i32
    return %arg0, %c0_i32 : i32, i32
  }
  func.func @transform_1(%arg0: i32) -> (i32, i32) {
    %c0_i32 = arith.constant 0 : i32
    %c0_i32_0 = arith.constant 0 : i32
    return %arg0, %c0_i32 : i32, i32
  }
  func.func @transform_2(%arg0: i32) -> (i32, i32) {
    %c0_i32 = arith.constant 0 : i32
    %c0_i32_0 = arith.constant 0 : i32
    %c0_i32_1 = arith.constant 0 : i32
    return %c0_i32, %c0_i32_0 : i32, i32
  }
  func.func @transform_3(%arg0: i32) -> (i32, i32) {
    %c0_i32 = arith.constant 0 : i32
    %c0_i32_0 = arith.constant 0 : i32
    %c0_i32_1 = arith.constant 0 : i32
    return %c0_i32, %c0_i32_0 : i32, i32
  }
  func.func @transform_4(%arg0: i32) -> (i32, i32, i32) {
    %c0_i32 = arith.constant 0 : i32
    %c0_i32_0 = arith.constant 0 : i32
    %c0_i32_1 = arith.constant 0 : i32
    %c0_i32_2 = arith.constant 0 : i32
    return %c0_i32, %c0_i32_0, %c0_i32_1 : i32, i32, i32
  }
  func.func @transform_5(%arg0: i32) -> (i32, i32, i32) {
    %c0_i32 = arith.constant 0 : i32
    %c0_i32_0 = arith.constant 0 : i32
    %c0_i32_1 = arith.constant 0 : i32
    %c0_i32_2 = arith.constant 0 : i32
    return %c0_i32, %c0_i32_0, %c0_i32_1 : i32, i32, i32
  }
  func.func @transform_6(%arg0: i32) -> (i32, i32) {
    %c0_i32 = arith.constant 0 : i32
    %c0_i32_0 = arith.constant 0 : i32
    %c0_i32_1 = arith.constant 0 : i32
    return %c0_i32, %c0_i32_0 : i32, i32
  }
  func.func @transform_7(%arg0: i32) -> (i32, i32) {
    %c0_i32 = arith.constant 0 : i32
    %c0_i32_0 = arith.constant 0 : i32
    %c0_i32_1 = arith.constant 0 : i32
    return %c0_i32, %c0_i32_0 : i32, i32
  }
  func.func @transform_8(%arg0: i32) -> (i32, i32) {
    %c0_i32 = arith.constant 0 : i32
    %c0_i32_0 = arith.constant 0 : i32
    return %arg0, %c0_i32 : i32, i32
  }
}

</mosaic_0001>

<bundles_post_ra>
// kernel: tpu_custom_call.1
= control target key start
LH: loop header
LB: loop body
LE: loop exit
PB: predicated region body
PF: predicated region fallthrough
CT: control target
= control target key end

     0   :  { %13 = vsyncpa [#allocation3], 0  ;;  %s1246_s0 = inlined_call_operand.vmem [shape: s32[8,1], index: 0, kind: input, shape index: {}]   ;;  %s1247_s1 = inlined_call_operand.vmem [shape: s32[8,1], index: 1, kind: input, shape index: {}]   ;;  %s1248_s2 = inlined_call_operand.hbm [shape: bf16[128,128], index: 2, kind: input, shape index: {}]   ;;  %s1249_s3 = inlined_call_operand.hbm [shape: bf16[128,128], index: 3, kind: input, shape index: {}]   ;;  %s1250_s4 = inlined_call_operand.hbm [shape: bf16[2,128,128], index: 4, kind: input, shape index: {}]   ;;  %s1251_s5 = inlined_call_operand.vmem [shape: f32[2,1,128], index: 5, kind: input, shape index: {}]   ;;  %s1252_s6 = inlined_call_operand.hbm [shape: bf16[128,128], index: 6, kind: input, shape index: {}]   ;;  %s1253_s7 = inlined_call_operand.vmem [shape: f32[1,128], index: 7, kind: input, shape index: {}]   ;;  %s1254_s8 = inlined_call_operand.hbm [shape: f32[8,128], index: 8, kind: output, shape index: {}]  }
   0x1   :  { %14 = vsyncpa [#allocation6], 0 }
   0x2   :  { %15 = vsyncpa [#allocation9], 0 }
   0x3   :  { %16 = vsyncpa [#allocation4], 0  ;;  %s1039_s27 = smov [#allocation5]   ;;  %s1040_s29 = smov [#allocation2]  }
   0x4   :  { %s38_s28 = sshll.u32 %s1039_s27, 4  ;;  %s26_s30 = sshll.u32 %s1040_s29, 4  ;;  %s39_s28 = int_to_ptr.vmem [resolvable:$true] %s38_s28  ;;  %s1095_s30 = int_to_ptr.vmem [resolvable:$true] %s26_s30 }
   0x5   :  { %s921_s11 = scalar_lea.hbm %s1249_s3, 1024 }
   0x6   :  { %p922_p0 = scmp.ne.s32.totalorder %s1249_s3, %s921_s11  ;;  %p925_p1 = scmp.lt.u32.totalorder %s921_s11, %s1249_s3 }
   0x8   :  { %p927_p2 = pnand %p925_p1, %p922_p0 }
   0xa   :  { %930 = shalt.err (!%p927_p2)
}
   0xb   :  { %s931_s16 = scalar_lea.vmem %s39_s28, 1024  ;;  %p936_p4 = scmp.lt.s32.totalorder %s39_s28, %s39_s28 }
   0xc   :  { %p932_p3 = scmp.ne.s32.totalorder %s39_s28, %s931_s16  ;;  %p937_p5 = scmp.lt.s32.totalorder %s931_s16, %s931_s16 }
   0xe   :  { %p938_p6 = por %p937_p5, %p936_p4 }
  0x10   :  { %p939_p7 = pnand %p938_p6, %p932_p3 }
  0x12   :  { %942 = shalt.err (!%p939_p7)
}
  0x13   :  { %s1041_s17 = smov 64   ;;  %s1042_s18 = smov 4  }
  0x14   :  { %44 = dma.hbm_to_vmem [thread:$0]  %s1249_s3, 1024, %s39_s28, [#allocation6], %s1041_s17, %s1041_s17, %s1042_s18  }
  0x15   :  { %s943_s23 = scalar_lea.hbm %s1248_s2, 1024 }
  0x16   :  { %p944_p8 = scmp.ne.s32.totalorder %s1248_s2, %s943_s23  ;;  %p947_p9 = scmp.lt.u32.totalorder %s943_s23, %s1248_s2 }
  0x18   :  { %p949_p10 = pnand %p947_p9, %p944_p8 }
  0x1a   :  { %952 = shalt.err (!%p949_p10)
}
  0x1b   :  { %s953_s29 = scalar_lea.vmem %s1095_s30, 1024  ;;  %p958_p12 = scmp.lt.s32.totalorder %s1095_s30, %s1095_s30 }
  0x1c   :  { %p954_p11 = scmp.ne.s32.totalorder %s1095_s30, %s953_s29  ;;  %p959_p13 = scmp.lt.s32.totalorder %s953_s29, %s953_s29 }
  0x1e   :  { %p960_p0 = por %p959_p13, %p958_p12 }
  0x20   :  { %p961_p1 = pnand %p960_p0, %p954_p11 }
  0x22   :  { %964 = shalt.err (!%p961_p1)
}
  0x23   :  { %32 = dma.hbm_to_vmem [thread:$0]  %s1248_s2, 1024, %s1095_s30, [#allocation3], %s1041_s17, %s1041_s17, %s1042_s18  }
  0x24   :  { %s1043_s9 = smov [#allocation7]   ;;  %s1044_s11 = smov [#allocation8]  }
  0x25   :  { %s50_s10 = sshll.u32 %s1043_s9, 4  ;;  %s64_s12 = sshll.u32 %s1044_s11, 4  ;;  %s51_s10 = int_to_ptr.vmem [resolvable:$true] %s50_s10  ;;  %s1132_s12 = int_to_ptr.vmem [resolvable:$true] %s64_s12 }
  0x26   :  { %s965_s15 = scalar_lea.hbm %s1250_s4, 2048 }
  0x27   :  { %p966_p2 = scmp.ne.s32.totalorder %s1250_s4, %s965_s15  ;;  %p969_p3 = scmp.lt.u32.totalorder %s965_s15, %s1250_s4 }
  0x29   :  { %p971_p4 = pnand %p969_p3, %p966_p2 }
  0x2b   :  { %974 = shalt.err (!%p971_p4)
}
  0x2c   :  { %s975_s2 = scalar_lea.vmem %s51_s10, 2048  ;;  %p980_p6 = scmp.lt.s32.totalorder %s51_s10, %s51_s10 }
  0x2d   :  { %p976_p5 = scmp.ne.s32.totalorder %s51_s10, %s975_s2  ;;  %p981_p7 = scmp.lt.s32.totalorder %s975_s2, %s975_s2 }
  0x2f   :  { %p982_p8 = por %p981_p7, %p980_p6 }
  0x31   :  { %p983_p9 = pnand %p982_p8, %p976_p5 }
  0x33   :  { %986 = shalt.err (!%p983_p9)
}
  0x34   :  { %56 = dma.hbm_to_vmem [thread:$0]  %s1250_s4, 2048, %s51_s10, [#allocation6], %s1041_s17, %s1041_s17, %s1042_s18  }
  0x35   :  { %s987_s25 = scalar_lea.hbm %s1252_s6, 1024 }
  0x36   :  { %p988_p10 = scmp.ne.s32.totalorder %s1252_s6, %s987_s25  ;;  %p991_p11 = scmp.lt.u32.totalorder %s987_s25, %s1252_s6 }
  0x38   :  { %p993_p12 = pnand %p991_p11, %p988_p10 }
  0x3a   :  { %996 = shalt.err (!%p993_p12)
}
  0x3b   :  { %s997_s28 = scalar_lea.vmem %s1132_s12, 1024  ;;  %p1002_p0 = scmp.lt.s32.totalorder %s1132_s12, %s1132_s12 }
  0x3c   :  { %p998_p13 = scmp.ne.s32.totalorder %s1132_s12, %s997_s28  ;;  %p1003_p1 = scmp.lt.s32.totalorder %s997_s28, %s997_s28 }
  0x3e   :  { %p1004_p2 = por %p1003_p1, %p1002_p0 }
  0x40   :  { %p1005_p3 = pnand %p1004_p2, %p998_p13 }
  0x42   :  { %1008 = shalt.err (!%p1005_p3)
}
  0x43   :  { %70 = dma.hbm_to_vmem [thread:$0]  %s1252_s6, 1024, %s1132_s12, [#allocation9], %s1041_s17, %s1041_s17, %s1042_s18  }
  0x44   :  { %1031 = dma.done.wait [#allocation3], 1024  }
  0x45   :  { %1032 = vsyncadd [#allocation3], 4294966272 }
  0x46   :  { %1033 = dma.done.wait [#allocation6], 3072  }
  0x47   :  { %1034 = vsyncadd [#allocation6], 4294964224 }
  0x48   :  { %1035 = dma.done.wait [#allocation9], 1024  }
  0x49   :  { %1036 = vsyncadd [#allocation9], 4294966272  ;;  %v1045_v0 = vmov 0   ;;  %v1046_v1 = vmov 0.0   ;;  %v87_v2 = vld [vmem:[%s1247_s1] sm:$0xff]  ;;  %vm1047_vm0 = vmmov 0   ;;  %v88_v19 = vlaneseq }
  0x4a   :  { %880 = vset.pattern.permute.xlu0 %v1045_v0  ;;  %765 = vmatprep.subr.bf16.mxu0 %v1046_v1  ;;  %v881_v3 = vld [vmem:[#allocation5] sm:$0xff]   ;;  %v882_v5 = vld [vmem:[#allocation5 + $0x8] sm:$0xff]   ;;  %v883_v6 = vld [vmem:[#allocation5 + $0x10] sm:$0xff]   ;;  %v1048_v23 = vmov 1.0|1.0   ;;  %s1049_s15 = smov [#allocation10]  }
  0x4b   :  { %805 = vmatprep.subr.bf16.mxu1 %v1046_v1  ;;  %98 = vperm.xlu0 %880, %v87_v2   ;;  %v86_v4 = vld [vmem:[%s1246_s0] sm:$0xff]  ;;  %v884_v7 = vld [vmem:[#allocation5 + $0x18] sm:$0xff]   ;;  %v886_v9 = vld [vmem:[#allocation5 + $0x28] sm:$0xff]   ;;  %v89_v20 = vand.u32 127, %v88_v19  ;;  %s659_s16 = sshll.u32 %s1049_s15, 4  ;;  %s660_s16 = int_to_ptr.vmem [resolvable:$true] %s659_s16 }
  0x4c   :  { %781 = vmatprep.mubr.msk.bf16.mxu0 %vm1047_vm0, %v1046_v1  ;;  %821 = vmatprep.mubr.msk.bf16.mxu1 %vm1047_vm0, %v1046_v1  ;;  %v885_v8 = vld [vmem:[#allocation5 + $0x20] sm:$0xff]   ;;  %v887_v10 = vld [vmem:[#allocation5 + $0x30] sm:$0xff]   ;;  %v888_v11 = vld [vmem:[#allocation5 + $0x38] sm:$0xff]   ;;  %p1014_p5 = scmp.lt.s32.totalorder %s660_s16, %s660_s16 }
  0x4d   :  { %766 = vmatpush3.bf16.msra.mxu0 %v881_v3  ;;  %v897_v12 = vld [vmem:[#allocation7] sm:$0xff]   ;;  %v898_v13 = vld [vmem:[#allocation7 + $0x8] sm:$0xff]   ;;  %v899_v14 = vld [vmem:[#allocation7 + $0x10] sm:$0xff]  }
  0x4e   :  { %767 = vmatprep.subr.bf16.mxu0 %v1046_v1  ;;  %806 = vmatpush3.bf16.msra.mxu1 %v897_v12  ;;  %v900_v15 = vld [vmem:[#allocation7 + $0x18] sm:$0xff]   ;;  %v901_v16 = vld [vmem:[#allocation7 + $0x20] sm:$0xff]   ;;  %v902_v17 = vld [vmem:[#allocation7 + $0x28] sm:$0xff]  }
  0x4f   :  { %91 = vperm.xlu0 %880, %v86_v4   ;;  %807 = vmatprep.subr.bf16.mxu1 %v1046_v1  ;;  %v903_v18 = vld [vmem:[#allocation7 + $0x30] sm:$0xff]   ;;  %v889_v22 = vld [vmem:[#allocation2] sm:$0xff]   ;;  %v890_v24 = vld [vmem:[#allocation2 + $0x8] sm:$0xff]  }
  0x50   :  { %v891_v25 = vld [vmem:[#allocation2 + $0x10] sm:$0xff]   ;;  %v892_v26 = vld [vmem:[#allocation2 + $0x18] sm:$0xff]   ;;  %v893_v27 = vld [vmem:[#allocation2 + $0x20] sm:$0xff]  }
  0x51   :  { %768 = vmatpush3.bf16.msra.mxu0 %v882_v5  ;;  %v894_v28 = vld [vmem:[#allocation2 + $0x28] sm:$0xff]   ;;  %v895_v29 = vld [vmem:[#allocation2 + $0x30] sm:$0xff]   ;;  %v896_v31 = vld [vmem:[#allocation2 + $0x38] sm:$0xff]  }
  0x52   :  { %769 = vmatprep.subr.bf16.mxu0 %v1046_v1  ;;  %808 = vmatpush3.bf16.msra.mxu1 %v898_v13  ;;  %v904_v32 = vld [vmem:[#allocation7 + $0x38] sm:$0xff]   ;;  %v905_v34 = vld [vmem:[#allocation7 + $0x40] sm:$0xff]   ;;  %v906_v39 = vld [vmem:[#allocation7 + $0x48] sm:$0xff]  }
  0x53   :  { %809 = vmatprep.subr.bf16.mxu1 %v1046_v1  ;;  %v907_v40 = vld [vmem:[#allocation7 + $0x50] sm:$0xff]   ;;  %v908_v41 = vld [vmem:[#allocation7 + $0x58] sm:$0xff]   ;;  %v909_v42 = vld [vmem:[#allocation7 + $0x60] sm:$0xff]  }
  0x54   :  { %v910_v43 = vld [vmem:[#allocation7 + $0x68] sm:$0xff]   ;;  %v911_v44 = vld [vmem:[#allocation7 + $0x70] sm:$0xff]   ;;  %v912_v45 = vld [vmem:[#allocation7 + $0x78] sm:$0xff]  }
  0x55   :  { %770 = vmatpush3.bf16.msra.mxu0 %v883_v6  ;;  %v913_v46 = vld [vmem:[#allocation8] sm:$0xff]   ;;  %v914_v47 = vld [vmem:[#allocation8 + $0x8] sm:$0xff]   ;;  %v915_v48 = vld [vmem:[#allocation8 + $0x10] sm:$0xff]  }
  0x56   :  { %771 = vmatprep.subr.bf16.mxu0 %v1046_v1  ;;  %810 = vmatpush3.bf16.msra.mxu1 %v899_v14  ;;  %v916_v49 = vld [vmem:[#allocation8 + $0x18] sm:$0xff]   ;;  %v917_v50 = vld [vmem:[#allocation8 + $0x20] sm:$0xff]   ;;  %v918_v51 = vld [vmem:[#allocation8 + $0x28] sm:$0xff]  }
  0x57   :  { %811 = vmatprep.subr.bf16.mxu1 %v1046_v1  ;;  %v692_v52 = vld [vmem:[%s1251_s5] ss:$0 sm:$0xff]  ;;  %v919_v60 = vld [vmem:[#allocation8 + $0x30] sm:$0xff]   ;;  %v920_v61 = vld [vmem:[#allocation8 + $0x38] sm:$0xff]  }
  0x58   :  { %v702_v62 = vld [vmem:[%s1251_s5 + $0x1] ss:$0 sm:$0xff]  ;;  %s1009_s5 = scalar_lea.vmem %s660_s16, 128 }
  0x59   :  { %772 = vmatpush3.bf16.msra.mxu0 %v884_v7  ;;  %v711_v7 = vld [vmem:[%s1253_s7] ss:$0 sm:$0xff]  ;;  %p1010_p4 = scmp.ne.s32.totalorder %s660_s16, %s1009_s5  ;;  %p1015_p6 = scmp.lt.s32.totalorder %s1009_s5, %s1009_s5 }
  0x5a   :  { %773 = vmatprep.subr.bf16.mxu0 %v1046_v1  ;;  %812 = vmatpush3.bf16.msra.mxu1 %v900_v15 }
  0x5b   :  { %813 = vmatprep.subr.bf16.mxu1 %v1046_v1  ;;  %p1016_p7 = por %p1015_p6, %p1014_p5 }
  0x5d   :  { %774 = vmatpush3.bf16.msra.mxu0 %v885_v8  ;;  %p1017_p8 = pnand %p1016_p7, %p1010_p4 }
  0x5e   :  { %775 = vmatprep.subr.bf16.mxu0 %v1046_v1  ;;  %814 = vmatpush3.bf16.msra.mxu1 %v901_v16 }
  0x5f   :  { %815 = vmatprep.subr.bf16.mxu1 %v1046_v1 }
  0x61   :  { %776 = vmatpush3.bf16.msra.mxu0 %v886_v9 }
  0x62   :  { %777 = vmatprep.subr.bf16.mxu0 %v1046_v1  ;;  %816 = vmatpush3.bf16.msra.mxu1 %v902_v17 }
  0x63   :  { %817 = vmatprep.subr.bf16.mxu1 %v1046_v1 }
  0x65   :  { %778 = vmatpush3.bf16.msra.mxu0 %v887_v10 }
  0x66   :  { %779 = vmatprep.subr.bf16.mxu0 %v1046_v1  ;;  %818 = vmatpush3.bf16.msra.mxu1 %v903_v18 }
  0x67   :  { %819 = vmatprep.subr.bf16.mxu1 %v1046_v1 }
  0x69   :  { %780 = vmatpush3.bf16.msra.mxu0 %v888_v11 }
  0x6a   :  { %785 = vmatprep.subr.bf16.mxu0 %v1046_v1  ;;  %820 = vmatpush3.bf16.msra.mxu1 %v904_v32 }
  0x6b   :  { %825 = vmatprep.subr.bf16.mxu1 %v1046_v1 }
  0xca   :  { %v99_v21 = vpop.permute.xlu0 %98 }
  0xcb   :  { %vm100_vm1 = vcmp.eq.s32.totalorder %v89_v20, %v99_v21 }
  0xcc   :  { %vm680_vm2 = vmpackc.low %vm100_vm1, %vm100_vm1 }
  0xcd   :  { %782 = vmatmul.mubr.msk.bf16.vlgmr.msra.gmra.mrb[0].mxu0 %vm680_vm2, %v1048_v23 }
  0xce   :  { %786 = vmatpush3.bf16.msra.mxu0 %v889_v22  ;;  %801 = vmatprep.mubr.msk.bf16.mxu0 %vm1047_vm0, %v1046_v1  ;;  %v92_v30 = vpop.permute.xlu0 %91 }
  0xcf   :  { %787 = vmatprep.subr.bf16.mxu0 %v1046_v1  ;;  %vm93_vm3 = vcmp.eq.s32.totalorder %v89_v20, %v92_v30 }
  0xd0   :  { %vm690_vm4 = vmpackc.low %vm93_vm3, %vm93_vm3 }
  0xd2   :  { %788 = vmatpush3.bf16.msra.mxu0 %v890_v24 }
  0xd3   :  { %789 = vmatprep.subr.bf16.mxu0 %v1046_v1 }
  0xd6   :  { %790 = vmatpush3.bf16.msra.mxu0 %v891_v25 }
  0xd7   :  { %791 = vmatprep.subr.bf16.mxu0 %v1046_v1 }
  0xda   :  { %792 = vmatpush3.bf16.msra.mxu0 %v892_v26 }
  0xdb   :  { %793 = vmatprep.subr.bf16.mxu0 %v1046_v1 }
  0xde   :  { %794 = vmatpush3.bf16.msra.mxu0 %v893_v27 }
  0xdf   :  { %795 = vmatprep.subr.bf16.mxu0 %v1046_v1 }
  0xe2   :  { %796 = vmatpush3.bf16.msra.mxu0 %v894_v28 }
  0xe3   :  { %797 = vmatprep.subr.bf16.mxu0 %v1046_v1 }
  0xe6   :  { %798 = vmatpush3.bf16.msra.mxu0 %v895_v29 }
  0xe7   :  { %799 = vmatprep.subr.bf16.mxu0 %v1046_v1 }
  0xea   :  { %800 = vmatpush3.bf16.msra.mxu0 %v896_v31 }
  0xeb   :  { %845 = vmatprep.subr.bf16.mxu0 %v1046_v1 }
  0xed   :  { %802 = vmatmul.mubr.msk.bf16.vlgmr.msra.gmra.mrb[0].mxu0 %vm690_vm4, %v1048_v23 }
  0xee   :  { %861 = vmatprep.mubr.msk.bf16.mxu0 %vm1047_vm0, %v1046_v1  ;;  %846 = vmatpush3.bf16.msra.mxu0 %v913_v46 }
  0xef   :  { %847 = vmatprep.subr.bf16.mxu0 %v1046_v1 }
  0xf2   :  { %848 = vmatpush3.bf16.msra.mxu0 %v914_v47 }
  0xf3   :  { %849 = vmatprep.subr.bf16.mxu0 %v1046_v1 }
  0xf6   :  { %850 = vmatpush3.bf16.msra.mxu0 %v915_v48 }
  0xf7   :  { %851 = vmatprep.subr.bf16.mxu0 %v1046_v1 }
  0xfa   :  { %852 = vmatpush3.bf16.msra.mxu0 %v916_v49 }
  0xfb   :  { %853 = vmatprep.subr.bf16.mxu0 %v1046_v1 }
  0xfe   :  { %854 = vmatpush3.bf16.msra.mxu0 %v917_v50 }
  0xff   :  { %855 = vmatprep.subr.bf16.mxu0 %v1046_v1 }
 0x102   :  { %856 = vmatpush3.bf16.msra.mxu0 %v918_v51 }
 0x103   :  { %857 = vmatprep.subr.bf16.mxu0 %v1046_v1 }
 0x106   :  { %858 = vmatpush3.bf16.msra.mxu0 %v919_v60 }
 0x107   :  { %859 = vmatprep.subr.bf16.mxu0 %v1046_v1 }
 0x10a   :  { %860 = vmatpush3.bf16.msra.mxu0 %v920_v61 }
 0x1c0   :  { %v306_v33 = vpop.f32.mrb[0].mxu0 }
 0x1c1   :  { %v312_v35 = vpack.c.bf16 %v306_v33, %v306_v33  ;;  %v803_v36 = vpop.f32.mrb[1].mxu0 }
 0x1c2   :  { %v309_v37 = vpop.f32.mrb[2].mxu0 }
 0x1c3   :  { %v804_v38 = vpop.f32.mrb[3].mxu0  ;;  %822 = vmatmul.mubr.bf16.vlgmr.msra.gmra.mrb[0].mxu1 %v312_v35 }
 0x1c4   :  { %826 = vmatpush3.bf16.msra.mxu1 %v905_v34  ;;  %841 = vmatprep.mubr.msk.bf16.mxu1 %vm1047_vm0, %v1046_v1 }
 0x1c5   :  { %827 = vmatprep.subr.bf16.mxu1 %v1046_v1 }
 0x1c8   :  { %828 = vmatpush3.bf16.msra.mxu1 %v906_v39 }
 0x1c9   :  { %829 = vmatprep.subr.bf16.mxu1 %v1046_v1 }
 0x1cc   :  { %830 = vmatpush3.bf16.msra.mxu1 %v907_v40 }
 0x1cd   :  { %831 = vmatprep.subr.bf16.mxu1 %v1046_v1 }
 0x1d0   :  { %832 = vmatpush3.bf16.msra.mxu1 %v908_v41 }
 0x1d1   :  { %833 = vmatprep.subr.bf16.mxu1 %v1046_v1 }
 0x1d4   :  { %834 = vmatpush3.bf16.msra.mxu1 %v909_v42 }
 0x1d5   :  { %835 = vmatprep.subr.bf16.mxu1 %v1046_v1 }
 0x1d8   :  { %836 = vmatpush3.bf16.msra.mxu1 %v910_v43 }
 0x1d9   :  { %837 = vmatprep.subr.bf16.mxu1 %v1046_v1 }
 0x1dc   :  { %838 = vmatpush3.bf16.msra.mxu1 %v911_v44 }
 0x1dd   :  { %839 = vmatprep.subr.bf16.mxu1 %v1046_v1 }
 0x1e0   :  { %840 = vmatpush3.bf16.msra.mxu1 %v912_v45 }
 0x296   :  { %v418_v53 = vpop.f32.mrb[0].mxu1 }
 0x297   :  { %v419_v54 = vadd.f32 %v692_v52, %v418_v53  ;;  %v823_v55 = vpop.f32.mrb[1].mxu1 }
 0x298   :  { %v421_v56 = vpop.f32.mrb[2].mxu1 }
 0x299   :  { %v424_v57 = vmax.f32 %v419_v54, 0.0  ;;  %v824_v58 = vpop.f32.mrb[3].mxu1 }
 0x29b   :  { %v425_v59 = vpack.c.bf16 %v424_v57, %v424_v57 }
 0x29d   :  { %842 = vmatmul.mubr.bf16.vlgmr.msra.gmra.mrb[4].mxu1 %v425_v59 }
 0x370   :  { %v533_v63 = vpop.f32.mrb[4].mxu1 }
 0x371   :  { %v534_v0 = vadd.f32 %v702_v62, %v533_v63  ;;  %v843_v2 = vpop.f32.mrb[5].mxu1 }
 0x372   :  { %v536_v3 = vpop.f32.mrb[6].mxu1 }
 0x373   :  { %v539_v4 = vmax.f32 %v534_v0, 0.0  ;;  %v844_v5 = vpop.f32.mrb[7].mxu1 }
 0x375   :  { %v540_v6 = vpack.c.bf16 %v539_v4, %v539_v4 }
 0x377   :  { %862 = vmatmul.mubr.bf16.vlgmr.msra.gmra.mrb[4].mxu0 %v540_v6 }
 0x44a   :  { %v646_v1 = vpop.f32.mrb[4].mxu0 }
 0x44b   :  { %v647_v8 = vadd.f32 %v711_v7, %v646_v1  ;;  %v863_v9 = vpop.f32.mrb[5].mxu0 }
 0x44c   :  { %v649_v10 = vpop.f32.mrb[6].mxu0 }
 0x44d   :  { %652 = vst [vmem:[#allocation10] sm:$0xff] %v647_v8  ;;  %v864_v11 = vpop.f32.mrb[7].mxu0 }
 0x44e   :  { %1020 = shalt.err (!%p1017_p8)
}
 0x44f   :  { %s1021_s7 = scalar_lea.hbm %s1254_s8, 128 }
 0x450   :  { %p1022_p9 = scmp.ne.s32.totalorder %s1254_s8, %s1021_s7  ;;  %p1025_p10 = scmp.lt.u32.totalorder %s1021_s7, %s1254_s8 }
 0x452   :  { %p1027_p11 = pnand %p1025_p10, %p1022_p9 }
 0x454   :  { %1030 = shalt.err (!%p1027_p11)
}
 0x455   :  { %662 = dma.vmem_to_hbm [thread:$0]  %s660_s16, 128, %s1254_s8, [#allocation4]  }
 0x456   :  { %1037 = dma.done.wait [#allocation4], 128  }
 0x457   :  { %1038 = vsyncadd [#allocation4], 4294967168 }
 0x458   :  { %666 = vsyncpa [#allocation3], 1 }
 0x459   :  { %667 = vsyncpa [#allocation6], 1 }
 0x45a   :  { %668 = vsyncpa [#allocation9], 1 }
 0x45b   :  { %669 = vsyncpa [#allocation4], 1 }

</bundles_post_ra>
